<compile_context>
chip_gen: v7x
topology: tpu7x:2x2x1
jax: 0.10.0
libtpu: 0.0.40
codegen_flags: <defaults>
</compile_context>

<pallas_src>
import functools
import math

import jax
import jax.numpy as jnp
from jax import lax
from jax.experimental import pallas as pl
from jax.experimental.pallas import tpu as pltpu


def _encoder_layer_kernel(num_heads, tile_q,
                          xb_ref, posb_ref,
                          wq_ref, wk_ref, wv_ref, wo_ref, w1_ref, w2_ref,
                          bq_ref, bk_ref, bv_ref, b1_ref, vec_ref,
                          out_ref,
                          k_scr, v_scr):
    """One (batch b, query-tile qi) grid step.

    vec_ref rows: 0=out_proj_bias, 1=b2, 2=ln1_gamma, 3=ln1_beta,
                  4=ln2_gamma, 5=ln2_beta.
    """
    qi = pl.program_id(1)
    emb = xb_ref.shape[2]

    # ---- per-batch K / V projection into head-major bf16 scratch -----------
    # Runs only on the first query tile of each batch; the scratch stays
    # resident for the remaining q tiles (q-tile grid axis is "arbitrary").
    @pl.when(qi == 0)
    def _():
        xb = xb_ref[0]                                     # (S, E) f32
        kv_in = (xb + posb_ref[0]).astype(jnp.bfloat16)    # keys use x + pos
        x_bf = xb.astype(jnp.bfloat16)                     # values use x
        for h in range(num_heads):                         # tiny (S, Dh) temps
            k_h = jnp.dot(kv_in, wk_ref[h],
                          preferred_element_type=jnp.float32) + bk_ref[h]
            v_h = jnp.dot(x_bf, wv_ref[h],
                          preferred_element_type=jnp.float32) + bv_ref[h]
            k_scr[h] = k_h.astype(jnp.bfloat16)
            v_scr[h] = v_h.astype(jnp.bfloat16)

    # ---- query tile ---------------------------------------------------------
    q_start = pl.multiple_of(qi * tile_q, tile_q)
    xq = xb_ref[0, pl.ds(q_start, tile_q), :]              # (TQ, E) f32
    posq = posb_ref[0, pl.ds(q_start, tile_q), :]
    q_in = (xq + posq).astype(jnp.bfloat16)

    # ---- multi-head attention; heads accumulated into the out projection ---
    def head_body(h, acc):
        # Softmax scale is folded into wq / bq on the host.
        q_h = jnp.dot(q_in, wq_ref[h],
                      preferred_element_type=jnp.float32) + bq_ref[h]   # (TQ, Dh)
        s = lax.dot_general(q_h.astype(jnp.bfloat16), k_scr[h],
                            (((1,), (1,)), ((), ())),
                            preferred_element_type=jnp.float32)         # (TQ, S)
        s = s - jnp.max(s, axis=-1, keepdims=True)
        p = jnp.exp(s)
        inv = pl.reciprocal(jnp.sum(p, axis=-1, keepdims=True), approx=True)
        p_bf = (p * inv).astype(jnp.bfloat16)                           # bf16 probs
        o_h = jnp.dot(p_bf, v_scr[h],
                      preferred_element_type=jnp.float32)               # (TQ, Dh)
        return acc + jnp.dot(o_h.astype(jnp.bfloat16), wo_ref[h],
                             preferred_element_type=jnp.float32)        # (TQ, E)

    attn = lax.fori_loop(0, num_heads, head_body,
                         jnp.zeros((tile_q, emb), jnp.float32))
    attn = attn + vec_ref[0:1, :]                          # + out-proj bias

    # ---- residual + LayerNorm1 (dropout1 = identity, eval mode) -------------
    h1 = xq + attn
    mu1 = jnp.mean(h1, axis=-1, keepdims=True)
    var1 = jnp.mean((h1 - mu1) ** 2, axis=-1, keepdims=True)
    h1n = (h1 - mu1) * lax.rsqrt(var1 + 1e-5) * vec_ref[2:3, :] + vec_ref[3:4, :]

    # ---- FFN: Linear -> ReLU -> Linear (MLP dropouts = identity) ------------
    f = jnp.dot(h1n.astype(jnp.bfloat16), w1_ref[...],
                preferred_element_type=jnp.float32) + b1_ref[...]
    f = jnp.maximum(f, 0.0)
    f = jnp.dot(f.astype(jnp.bfloat16), w2_ref[...],
                preferred_element_type=jnp.float32) + vec_ref[1:2, :]

    # ---- residual + LayerNorm2 (dropout2 = identity, eval mode) -------------
    h2 = h1n + f
    mu2 = jnp.mean(h2, axis=-1, keepdims=True)
    var2 = jnp.mean((h2 - mu2) ** 2, axis=-1, keepdims=True)
    out = (h2 - mu2) * lax.rsqrt(var2 + 1e-5) * vec_ref[4:5, :] + vec_ref[5:6, :]

    # NOTE: for toy E < 128 this is a masked partial store; for production
    # E (a multiple of 128) it is lane-dense.
    out_ref[0] = out.astype(out_ref.dtype)


def pack_params(params, num_heads):
    """One-time host-side weight packing (hoisted out of the per-call path)."""
    E = params["ln1_gamma"].shape[0]
    Dh = E // num_heads
    scale = 1.0 / math.sqrt(Dh)

    in_w = params["in_proj_weight"]        # (3E, E)
    in_b = params["in_proj_bias"]          # (3E,)
    wq, wk, wv = in_w[:E], in_w[E:2 * E], in_w[2 * E:]
    bq, bk, bv = in_b[:E], in_b[E:2 * E], in_b[2 * E:]

    def head_major(w_t):                   # (E_in, E_out) -> (H, E_in, Dh)
        return jnp.transpose(w_t.reshape(E, num_heads, Dh), (1, 0, 2))

    return {
        # Softmax scale folded into the Q projection.
        "wq": head_major(wq.T * scale).astype(jnp.bfloat16),    # (H, E, Dh)
        "wk": head_major(wk.T).astype(jnp.bfloat16),            # (H, E, Dh)
        "wv": head_major(wv.T).astype(jnp.bfloat16),            # (H, E, Dh)
        "wo": params["out_proj_weight"].T.reshape(num_heads, Dh, E
                                                  ).astype(jnp.bfloat16),
        "w1": params["w1"].T.astype(jnp.bfloat16),              # (E, FFN)
        "w2": params["w2"].T.astype(jnp.bfloat16),              # (FFN, E)
        "bq": (bq * scale).reshape(num_heads, 1, Dh).astype(jnp.float32),
        "bk": bk.reshape(num_heads, 1, Dh).astype(jnp.float32),
        "bv": bv.reshape(num_heads, 1, Dh).astype(jnp.float32),
        "b1": params["b1"].reshape(1, -1).astype(jnp.float32),  # (1, FFN)
        # rows: 0=b_o, 1=b2, 2=ln1_g, 3=ln1_b, 4=ln2_g, 5=ln2_b
        "vec": jnp.stack([params["out_proj_bias"], params["b2"],
                          params["ln1_gamma"], params["ln1_beta"],
                          params["ln2_gamma"], params["ln2_beta"]]
                         ).astype(jnp.float32),
    }


def _pick_tile_q(S):
    if S <= 256:
        return S                           # whole sequence; block == full dim
    for t in (512, 256, 128, 64, 32, 16, 8):
        if S % t == 0:
            return t
    return S


def transformer_encoder_layer(x_sbe, pos_sbe, packed, num_heads):
    """x_sbe, pos_sbe: (S, B, E) (PyTorch MHA layout). Returns (S, B, E)."""
    S, B, E = x_sbe.shape
    Dh = E // num_heads
    tile_q = _pick_tile_q(S)
    n_q = S // tile_q

    # Per-batch attention: one cheap XLA transpose to (B, S, E) each way.
    x_bse = jnp.transpose(x_sbe, (1, 0, 2))
    pos_bse = jnp.transpose(pos_sbe, (1, 0, 2))

    weights = [packed["wq"], packed["wk"], packed["wv"], packed["wo"],
               packed["w1"], packed["w2"], packed["bq"], packed["bk"],
               packed["bv"], packed["b1"], packed["vec"]]

    def const_spec(arr):
        nd = arr.ndim
        return pl.BlockSpec(arr.shape, lambda b, i, _nd=nd: (0,) * _nd)

    seq_spec = pl.BlockSpec((1, S, E), lambda b, i: (b, 0, 0))

    kernel = functools.partial(_encoder_layer_kernel, num_heads, tile_q)

    out_bse = pl.pallas_call(
        kernel,
        out_shape=jax.ShapeDtypeStruct((B, S, E), x_bse.dtype),
        grid=(B, n_q),
        in_specs=[seq_spec, seq_spec] + [const_spec(w) for w in weights],
        out_specs=pl.BlockSpec((1, tile_q, E), lambda b, i: (b, i, 0)),
        scratch_shapes=[pltpu.VMEM((num_heads, S, Dh), jnp.bfloat16),
                        pltpu.VMEM((num_heads, S, Dh), jnp.bfloat16)],
        compiler_params=pltpu.CompilerParams(
            # Batch axis parallel (megacore on v7x); q-tile axis must stay
            # "arbitrary" because K/V scratch is filled at qi == 0 and reused.
            dimension_semantics=("parallel", "arbitrary"),
            vmem_limit_bytes=32 * 1024 * 1024,
        ),
    )(x_bse, pos_bse, *weights)

    return jnp.transpose(out_bse, (1, 0, 2))


def init_params(key, E, ffn_dim):
    ks = jax.random.split(key, 8)
    u = lambda k, shape, s: jax.random.uniform(k, shape, jnp.float32, -s, s)
    return {
        "in_proj_weight": u(ks[0], (3 * E, E), 1.0 / math.sqrt(E)),
        "in_proj_bias":   u(ks[1], (3 * E,), 0.1),
        "out_proj_weight": u(ks[2], (E, E), 1.0 / math.sqrt(E)),
        "out_proj_bias":   u(ks[3], (E,), 0.1),
        "ln1_gamma": jnp.ones((E,), jnp.float32),
        "ln1_beta":  jnp.zeros((E,), jnp.float32),
        "w1": u(ks[4], (ffn_dim, E), 1.0 / math.sqrt(E)),
        "b1": u(ks[5], (ffn_dim,), 0.1),
        "w2": u(ks[6], (E, ffn_dim), 1.0 / math.sqrt(ffn_dim)),
        "b2": u(ks[7], (E,), 0.1),
        "ln2_gamma": jnp.ones((E,), jnp.float32),
        "ln2_beta":  jnp.zeros((E,), jnp.float32),
    }


def reference(x, pos, params, num_heads):
    """Pure-JAX f32 reference matching the PyTorch forward (eval mode)."""
    S, B, E = x.shape
    Dh = E // num_heads
    in_w, in_b = params["in_proj_weight"], params["in_proj_bias"]
    qk = x + pos
    q = qk @ in_w[:E].T + in_b[:E]
    k = qk @ in_w[E:2 * E].T + in_b[E:2 * E]
    v = x @ in_w[2 * E:].T + in_b[2 * E:]
    split = lambda t: jnp.transpose(t.reshape(S, B, num_heads, Dh), (1, 2, 0, 3))
    qh, kh, vh = split(q), split(k), split(v)
    scores = jnp.einsum('bhqd,bhkd->bhqk', qh, kh) / math.sqrt(Dh)
    p = jax.nn.softmax(scores, axis=-1)
    o = jnp.einsum('bhqk,bhkd->bhqd', p, vh)
    o = jnp.transpose(o, (2, 0, 1, 3)).reshape(S, B, E)
    attn = o @ params["out_proj_weight"].T + params["out_proj_bias"]

    def ln(t, g, b):
        mu = t.mean(-1, keepdims=True)
        var = ((t - mu) ** 2).mean(-1, keepdims=True)
        return (t - mu) / jnp.sqrt(var + 1e-5) * g + b

    h1 = ln(x + attn, params["ln1_gamma"], params["ln1_beta"])
    f = jnp.maximum(h1 @ params["w1"].T + params["b1"], 0.0)
    f = f @ params["w2"].T + params["b2"]
    return ln(h1 + f, params["ln2_gamma"], params["ln2_beta"])


if __name__ == "__main__":
    # TODO(synk): dropout (attention dropout, dropout1/2, MLP dropouts) is
    # stochastic in train mode; this implements eval-mode (identity) dropout.
    S, B, E, H, FFN = 16, 2, 32, 4, 64

    key = jax.random.PRNGKey(0)
    kx, kp, kw = jax.random.split(key, 3)
    x = jax.random.normal(kx, (S, B, E), jnp.float32)
    pos = jax.random.normal(kp, (S, B, E), jnp.float32)
    params = init_params(kw, E, FFN)

    packed = pack_params(params, H)        # one-time weight packing
    fwd = jax.jit(functools.partial(transformer_encoder_layer, num_heads=H))
    out = jax.block_until_ready(fwd(x, pos, packed))

    ref = reference(x, pos, params, H)
    assert out.shape == (S, B, E)
    err = jnp.max(jnp.abs(out - ref))
    # bf16 MXU operands (with f32 accumulation) => looser tolerance than f32.
    assert jnp.allclose(out, ref, atol=8e-2, rtol=8e-2), (
        f"mismatch: max abs err = {err}")

    print("KERNEL_OK")
</pallas_src>

<mosaic_0001>
module attributes {stable_mosaic.version = 11 : i64} {
  func.func @_encoder_layer_kernel(%arg0: i32, %arg1: i32, %arg2: memref<1x16x32xf32, #tpu.memory_space<vmem>>, %arg3: memref<1x16x32xf32, #tpu.memory_space<vmem>>, %arg4: memref<4x32x8xbf16, #tpu.memory_space<vmem>>, %arg5: memref<4x32x8xbf16, #tpu.memory_space<vmem>>, %arg6: memref<4x32x8xbf16, #tpu.memory_space<vmem>>, %arg7: memref<4x8x32xbf16, #tpu.memory_space<vmem>>, %arg8: memref<32x64xbf16, #tpu.memory_space<vmem>>, %arg9: memref<64x32xbf16, #tpu.memory_space<vmem>>, %arg10: memref<4x1x8xf32, #tpu.memory_space<vmem>>, %arg11: memref<4x1x8xf32, #tpu.memory_space<vmem>>, %arg12: memref<4x1x8xf32, #tpu.memory_space<vmem>>, %arg13: memref<1x64xf32, #tpu.memory_space<vmem>>, %arg14: memref<6x32xf32, #tpu.memory_space<vmem>>, %arg15: memref<1x16x32xf32, #tpu.memory_space<vmem>>, %arg16: memref<4x16x8xbf16, #tpu.memory_space<vmem>>, %arg17: memref<4x16x8xbf16, #tpu.memory_space<vmem>>) attributes {dimension_semantics = [#tpu.dimension_semantics<parallel>, #tpu.dimension_semantics<arbitrary>], iteration_bounds = array<i64: 2, 1>, scalar_prefetch = 0 : i64, scratch_operands = 2 : i64, tpu.core_type = #tpu.core_type<tc>, window_params = [{transform_indices = @transform_0, window_bounds = array<i64: 1, 16, 32>}, {transform_indices = @transform_1, window_bounds = array<i64: 1, 16, 32>}, {pipeline_mode = #tpu.pipeline_mode<synchronous>, transform_indices = @transform_2, window_bounds = array<i64: 4, 32, 8>}, {pipeline_mode = #tpu.pipeline_mode<synchronous>, transform_indices = @transform_3, window_bounds = array<i64: 4, 32, 8>}, {pipeline_mode = #tpu.pipeline_mode<synchronous>, transform_indices = @transform_4, window_bounds = array<i64: 4, 32, 8>}, {pipeline_mode = #tpu.pipeline_mode<synchronous>, transform_indices = @transform_5, window_bounds = array<i64: 4, 8, 32>}, {pipeline_mode = #tpu.pipeline_mode<synchronous>, transform_indices = @transform_6, window_bounds = array<i64: 32, 64>}, {pipeline_mode = #tpu.pipeline_mode<synchronous>, transform_indices = @transform_7, window_bounds = array<i64: 64, 32>}, {pipeline_mode = #tpu.pipeline_mode<synchronous>, transform_indices = @transform_8, window_bounds = array<i64: 4, 1, 8>}, {pipeline_mode = #tpu.pipeline_mode<synchronous>, transform_indices = @transform_9, window_bounds = array<i64: 4, 1, 8>}, {pipeline_mode = #tpu.pipeline_mode<synchronous>, transform_indices = @transform_10, window_bounds = array<i64: 4, 1, 8>}, {pipeline_mode = #tpu.pipeline_mode<synchronous>, transform_indices = @transform_11, window_bounds = array<i64: 1, 64>}, {pipeline_mode = #tpu.pipeline_mode<synchronous>, transform_indices = @transform_12, window_bounds = array<i64: 6, 32>}, {transform_indices = @transform_13, window_bounds = array<i64: 1, 16, 32>}]} {
    %c0_i32 = arith.constant 0 : i32
    %0 = arith.cmpi eq, %arg1, %c0_i32 : i32
    %1 = arith.extui %0 : i1 to i32
    %c0_i32_0 = arith.constant 0 : i32
    %2 = arith.cmpi ne, %1, %c0_i32_0 : i32
    scf.if %2 {
      %c0_35 = arith.constant 0 : index
      %c0_36 = arith.constant 0 : index
      %c0_37 = arith.constant 0 : index
      %86 = vector.load %arg2[%c0_35, %c0_36, %c0_37] : memref<1x16x32xf32, #tpu.memory_space<vmem>>, vector<1x16x32xf32>
      %87 = vector.shape_cast %86 : vector<1x16x32xf32> to vector<16x32xf32>
      %c0_38 = arith.constant 0 : index
      %c0_39 = arith.constant 0 : index
      %c0_40 = arith.constant 0 : index
      %88 = vector.load %arg3[%c0_38, %c0_39, %c0_40] : memref<1x16x32xf32, #tpu.memory_space<vmem>>, vector<1x16x32xf32>
      %89 = vector.shape_cast %88 : vector<1x16x32xf32> to vector<16x32xf32>
      %90 = arith.addf %87, %89 : vector<16x32xf32>
      %91 = arith.truncf %90 : vector<16x32xf32> to vector<16x32xbf16>
      %92 = arith.truncf %87 : vector<16x32xf32> to vector<16x32xbf16>
      %c0_41 = arith.constant 0 : index
      %c0_42 = arith.constant 0 : index
      %c0_43 = arith.constant 0 : index
      %93 = vector.load %arg5[%c0_41, %c0_42, %c0_43] : memref<4x32x8xbf16, #tpu.memory_space<vmem>>, vector<1x32x8xbf16>
      %94 = vector.shape_cast %93 : vector<1x32x8xbf16> to vector<32x8xbf16>
      %cst_44 = arith.constant dense<0.000000e+00> : vector<16x8xf32>
      %95 = tpu.matmul %91, %94, %cst_44 {dimension_numbers = #tpu.dot_dimension_numbers<[1], [0], [0], [1], [0, 0, 1, 1], [], []>} : vector<16x32xbf16>, vector<32x8xbf16>, vector<16x8xf32> -> vector<16x8xf32>
      %c0_45 = arith.constant 0 : index
      %c0_46 = arith.constant 0 : index
      %c0_47 = arith.constant 0 : index
      %96 = vector.load %arg11[%c0_45, %c0_46, %c0_47] : memref<4x1x8xf32, #tpu.memory_space<vmem>>, vector<1x1x8xf32>
      %97 = vector.shape_cast %96 : vector<1x1x8xf32> to vector<1x8xf32>
      %98 = vector.broadcast %97 : vector<1x8xf32> to vector<16x8xf32>
      %99 = arith.addf %95, %98 : vector<16x8xf32>
      %c0_48 = arith.constant 0 : index
      %c0_49 = arith.constant 0 : index
      %c0_50 = arith.constant 0 : index
      %100 = vector.load %arg6[%c0_48, %c0_49, %c0_50] : memref<4x32x8xbf16, #tpu.memory_space<vmem>>, vector<1x32x8xbf16>
      %101 = vector.shape_cast %100 : vector<1x32x8xbf16> to vector<32x8xbf16>
      %cst_51 = arith.constant dense<0.000000e+00> : vector<16x8xf32>
      %102 = tpu.matmul %92, %101, %cst_51 {dimension_numbers = #tpu.dot_dimension_numbers<[1], [0], [0], [1], [0, 0, 1, 1], [], []>} : vector<16x32xbf16>, vector<32x8xbf16>, vector<16x8xf32> -> vector<16x8xf32>
      %c0_52 = arith.constant 0 : index
      %c0_53 = arith.constant 0 : index
      %c0_54 = arith.constant 0 : index
      %103 = vector.load %arg12[%c0_52, %c0_53, %c0_54] : memref<4x1x8xf32, #tpu.memory_space<vmem>>, vector<1x1x8xf32>
      %104 = vector.shape_cast %103 : vector<1x1x8xf32> to vector<1x8xf32>
      %105 = vector.broadcast %104 : vector<1x8xf32> to vector<16x8xf32>
      %106 = arith.addf %102, %105 : vector<16x8xf32>
      %107 = arith.truncf %99 : vector<16x8xf32> to vector<16x8xbf16>
      %c0_55 = arith.constant 0 : index
      %c0_56 = arith.constant 0 : index
      %c0_57 = arith.constant 0 : index
      %108 = vector.load %arg16[%c0_55, %c0_56, %c0_57] : memref<4x16x8xbf16, #tpu.memory_space<vmem>>, vector<1x16x8xbf16>
      %109 = vector.shape_cast %108 : vector<1x16x8xbf16> to vector<16x8xbf16>
      %110 = vector.shape_cast %107 : vector<16x8xbf16> to vector<1x16x8xbf16>
      tpu.vector_store %arg16[%c0_55, %c0_56, %c0_57], %110 {strides = array<i32>} : memref<4x16x8xbf16, #tpu.memory_space<vmem>>, vector<1x16x8xbf16>,
      %111 = arith.truncf %106 : vector<16x8xf32> to vector<16x8xbf16>
      %c0_58 = arith.constant 0 : index
      %c0_59 = arith.constant 0 : index
      %c0_60 = arith.constant 0 : index
      %112 = vector.load %arg17[%c0_58, %c0_59, %c0_60] : memref<4x16x8xbf16, #tpu.memory_space<vmem>>, vector<1x16x8xbf16>
      %113 = vector.shape_cast %112 : vector<1x16x8xbf16> to vector<16x8xbf16>
      %114 = vector.shape_cast %111 : vector<16x8xbf16> to vector<1x16x8xbf16>
      tpu.vector_store %arg17[%c0_58, %c0_59, %c0_60], %114 {strides = array<i32>} : memref<4x16x8xbf16, #tpu.memory_space<vmem>>, vector<1x16x8xbf16>,
      %c1_61 = arith.constant 1 : index
      %c0_62 = arith.constant 0 : index
      %c0_63 = arith.constant 0 : index
      %115 = vector.load %arg5[%c1_61, %c0_62, %c0_63] : memref<4x32x8xbf16, #tpu.memory_space<vmem>>, vector<1x32x8xbf16>
      %116 = vector.shape_cast %115 : vector<1x32x8xbf16> to vector<32x8xbf16>
      %cst_64 = arith.constant dense<0.000000e+00> : vector<16x8xf32>
      %117 = tpu.matmul %91, %116, %cst_64 {dimension_numbers = #tpu.dot_dimension_numbers<[1], [0], [0], [1], [0, 0, 1, 1], [], []>} : vector<16x32xbf16>, vector<32x8xbf16>, vector<16x8xf32> -> vector<16x8xf32>
      %c1_65 = arith.constant 1 : index
      %c0_66 = arith.constant 0 : index
      %c0_67 = arith.constant 0 : index
      %118 = vector.load %arg11[%c1_65, %c0_66, %c0_67] : memref<4x1x8xf32, #tpu.memory_space<vmem>>, vector<1x1x8xf32>
      %119 = vector.shape_cast %118 : vector<1x1x8xf32> to vector<1x8xf32>
      %120 = vector.broadcast %119 : vector<1x8xf32> to vector<16x8xf32>
      %121 = arith.addf %117, %120 : vector<16x8xf32>
      %c1_68 = arith.constant 1 : index
      %c0_69 = arith.constant 0 : index
      %c0_70 = arith.constant 0 : index
      %122 = vector.load %arg6[%c1_68, %c0_69, %c0_70] : memref<4x32x8xbf16, #tpu.memory_space<vmem>>, vector<1x32x8xbf16>
      %123 = vector.shape_cast %122 : vector<1x32x8xbf16> to vector<32x8xbf16>
      %cst_71 = arith.constant dense<0.000000e+00> : vector<16x8xf32>
      %124 = tpu.matmul %92, %123, %cst_71 {dimension_numbers = #tpu.dot_dimension_numbers<[1], [0], [0], [1], [0, 0, 1, 1], [], []>} : vector<16x32xbf16>, vector<32x8xbf16>, vector<16x8xf32> -> vector<16x8xf32>
      %c1_72 = arith.constant 1 : index
      %c0_73 = arith.constant 0 : index
      %c0_74 = arith.constant 0 : index
      %125 = vector.load %arg12[%c1_72, %c0_73, %c0_74] : memref<4x1x8xf32, #tpu.memory_space<vmem>>, vector<1x1x8xf32>
      %126 = vector.shape_cast %125 : vector<1x1x8xf32> to vector<1x8xf32>
      %127 = vector.broadcast %126 : vector<1x8xf32> to vector<16x8xf32>
      %128 = arith.addf %124, %127 : vector<16x8xf32>
      %129 = arith.truncf %121 : vector<16x8xf32> to vector<16x8xbf16>
      %c1_75 = arith.constant 1 : index
      %c0_76 = arith.constant 0 : index
      %c0_77 = arith.constant 0 : index
      %130 = vector.load %arg16[%c1_75, %c0_76, %c0_77] : memref<4x16x8xbf16, #tpu.memory_space<vmem>>, vector<1x16x8xbf16>
      %131 = vector.shape_cast %130 : vector<1x16x8xbf16> to vector<16x8xbf16>
      %132 = vector.shape_cast %129 : vector<16x8xbf16> to vector<1x16x8xbf16>
      tpu.vector_store %arg16[%c1_75, %c0_76, %c0_77], %132 {strides = array<i32>} : memref<4x16x8xbf16, #tpu.memory_space<vmem>>, vector<1x16x8xbf16>,
      %133 = arith.truncf %128 : vector<16x8xf32> to vector<16x8xbf16>
      %c1_78 = arith.constant 1 : index
      %c0_79 = arith.constant 0 : index
      %c0_80 = arith.constant 0 : index
      %134 = vector.load %arg17[%c1_78, %c0_79, %c0_80] : memref<4x16x8xbf16, #tpu.memory_space<vmem>>, vector<1x16x8xbf16>
      %135 = vector.shape_cast %134 : vector<1x16x8xbf16> to vector<16x8xbf16>
      %136 = vector.shape_cast %133 : vector<16x8xbf16> to vector<1x16x8xbf16>
      tpu.vector_store %arg17[%c1_78, %c0_79, %c0_80], %136 {strides = array<i32>} : memref<4x16x8xbf16, #tpu.memory_space<vmem>>, vector<1x16x8xbf16>,
      %c2_81 = arith.constant 2 : index
      %c0_82 = arith.constant 0 : index
      %c0_83 = arith.constant 0 : index
      %137 = vector.load %arg5[%c2_81, %c0_82, %c0_83] : memref<4x32x8xbf16, #tpu.memory_space<vmem>>, vector<1x32x8xbf16>
      %138 = vector.shape_cast %137 : vector<1x32x8xbf16> to vector<32x8xbf16>
      %cst_84 = arith.constant dense<0.000000e+00> : vector<16x8xf32>
      %139 = tpu.matmul %91, %138, %cst_84 {dimension_numbers = #tpu.dot_dimension_numbers<[1], [0], [0], [1], [0, 0, 1, 1], [], []>} : vector<16x32xbf16>, vector<32x8xbf16>, vector<16x8xf32> -> vector<16x8xf32>
      %c2_85 = arith.constant 2 : index
      %c0_86 = arith.constant 0 : index
      %c0_87 = arith.constant 0 : index
      %140 = vector.load %arg11[%c2_85, %c0_86, %c0_87] : memref<4x1x8xf32, #tpu.memory_space<vmem>>, vector<1x1x8xf32>
      %141 = vector.shape_cast %140 : vector<1x1x8xf32> to vector<1x8xf32>
      %142 = vector.broadcast %141 : vector<1x8xf32> to vector<16x8xf32>
      %143 = arith.addf %139, %142 : vector<16x8xf32>
      %c2_88 = arith.constant 2 : index
      %c0_89 = arith.constant 0 : index
      %c0_90 = arith.constant 0 : index
      %144 = vector.load %arg6[%c2_88, %c0_89, %c0_90] : memref<4x32x8xbf16, #tpu.memory_space<vmem>>, vector<1x32x8xbf16>
      %145 = vector.shape_cast %144 : vector<1x32x8xbf16> to vector<32x8xbf16>
      %cst_91 = arith.constant dense<0.000000e+00> : vector<16x8xf32>
      %146 = tpu.matmul %92, %145, %cst_91 {dimension_numbers = #tpu.dot_dimension_numbers<[1], [0], [0], [1], [0, 0, 1, 1], [], []>} : vector<16x32xbf16>, vector<32x8xbf16>, vector<16x8xf32> -> vector<16x8xf32>
      %c2_92 = arith.constant 2 : index
      %c0_93 = arith.constant 0 : index
      %c0_94 = arith.constant 0 : index
      %147 = vector.load %arg12[%c2_92, %c0_93, %c0_94] : memref<4x1x8xf32, #tpu.memory_space<vmem>>, vector<1x1x8xf32>
      %148 = vector.shape_cast %147 : vector<1x1x8xf32> to vector<1x8xf32>
      %149 = vector.broadcast %148 : vector<1x8xf32> to vector<16x8xf32>
      %150 = arith.addf %146, %149 : vector<16x8xf32>
      %151 = arith.truncf %143 : vector<16x8xf32> to vector<16x8xbf16>
      %c2_95 = arith.constant 2 : index
      %c0_96 = arith.constant 0 : index
      %c0_97 = arith.constant 0 : index
      %152 = vector.load %arg16[%c2_95, %c0_96, %c0_97] : memref<4x16x8xbf16, #tpu.memory_space<vmem>>, vector<1x16x8xbf16>
      %153 = vector.shape_cast %152 : vector<1x16x8xbf16> to vector<16x8xbf16>
      %154 = vector.shape_cast %151 : vector<16x8xbf16> to vector<1x16x8xbf16>
      tpu.vector_store %arg16[%c2_95, %c0_96, %c0_97], %154 {strides = array<i32>} : memref<4x16x8xbf16, #tpu.memory_space<vmem>>, vector<1x16x8xbf16>,
      %155 = arith.truncf %150 : vector<16x8xf32> to vector<16x8xbf16>
      %c2_98 = arith.constant 2 : index
      %c0_99 = arith.constant 0 : index
      %c0_100 = arith.constant 0 : index
      %156 = vector.load %arg17[%c2_98, %c0_99, %c0_100] : memref<4x16x8xbf16, #tpu.memory_space<vmem>>, vector<1x16x8xbf16>
      %157 = vector.shape_cast %156 : vector<1x16x8xbf16> to vector<16x8xbf16>
      %158 = vector.shape_cast %155 : vector<16x8xbf16> to vector<1x16x8xbf16>
      tpu.vector_store %arg17[%c2_98, %c0_99, %c0_100], %158 {strides = array<i32>} : memref<4x16x8xbf16, #tpu.memory_space<vmem>>, vector<1x16x8xbf16>,
      %c3_101 = arith.constant 3 : index
      %c0_102 = arith.constant 0 : index
      %c0_103 = arith.constant 0 : index
      %159 = vector.load %arg5[%c3_101, %c0_102, %c0_103] : memref<4x32x8xbf16, #tpu.memory_space<vmem>>, vector<1x32x8xbf16>
      %160 = vector.shape_cast %159 : vector<1x32x8xbf16> to vector<32x8xbf16>
      %cst_104 = arith.constant dense<0.000000e+00> : vector<16x8xf32>
      %161 = tpu.matmul %91, %160, %cst_104 {dimension_numbers = #tpu.dot_dimension_numbers<[1], [0], [0], [1], [0, 0, 1, 1], [], []>} : vector<16x32xbf16>, vector<32x8xbf16>, vector<16x8xf32> -> vector<16x8xf32>
      %c3_105 = arith.constant 3 : index
      %c0_106 = arith.constant 0 : index
      %c0_107 = arith.constant 0 : index
      %162 = vector.load %arg11[%c3_105, %c0_106, %c0_107] : memref<4x1x8xf32, #tpu.memory_space<vmem>>, vector<1x1x8xf32>
      %163 = vector.shape_cast %162 : vector<1x1x8xf32> to vector<1x8xf32>
      %164 = vector.broadcast %163 : vector<1x8xf32> to vector<16x8xf32>
      %165 = arith.addf %161, %164 : vector<16x8xf32>
      %c3_108 = arith.constant 3 : index
      %c0_109 = arith.constant 0 : index
      %c0_110 = arith.constant 0 : index
      %166 = vector.load %arg6[%c3_108, %c0_109, %c0_110] : memref<4x32x8xbf16, #tpu.memory_space<vmem>>, vector<1x32x8xbf16>
      %167 = vector.shape_cast %166 : vector<1x32x8xbf16> to vector<32x8xbf16>
      %cst_111 = arith.constant dense<0.000000e+00> : vector<16x8xf32>
      %168 = tpu.matmul %92, %167, %cst_111 {dimension_numbers = #tpu.dot_dimension_numbers<[1], [0], [0], [1], [0, 0, 1, 1], [], []>} : vector<16x32xbf16>, vector<32x8xbf16>, vector<16x8xf32> -> vector<16x8xf32>
      %c3_112 = arith.constant 3 : index
      %c0_113 = arith.constant 0 : index
      %c0_114 = arith.constant 0 : index
      %169 = vector.load %arg12[%c3_112, %c0_113, %c0_114] : memref<4x1x8xf32, #tpu.memory_space<vmem>>, vector<1x1x8xf32>
      %170 = vector.shape_cast %169 : vector<1x1x8xf32> to vector<1x8xf32>
      %171 = vector.broadcast %170 : vector<1x8xf32> to vector<16x8xf32>
      %172 = arith.addf %168, %171 : vector<16x8xf32>
      %173 = arith.truncf %165 : vector<16x8xf32> to vector<16x8xbf16>
      %c3_115 = arith.constant 3 : index
      %c0_116 = arith.constant 0 : index
      %c0_117 = arith.constant 0 : index
      %174 = vector.load %arg16[%c3_115, %c0_116, %c0_117] : memref<4x16x8xbf16, #tpu.memory_space<vmem>>, vector<1x16x8xbf16>
      %175 = vector.shape_cast %174 : vector<1x16x8xbf16> to vector<16x8xbf16>
      %176 = vector.shape_cast %173 : vector<16x8xbf16> to vector<1x16x8xbf16>
      tpu.vector_store %arg16[%c3_115, %c0_116, %c0_117], %176 {strides = array<i32>} : memref<4x16x8xbf16, #tpu.memory_space<vmem>>, vector<1x16x8xbf16>,
      %177 = arith.truncf %172 : vector<16x8xf32> to vector<16x8xbf16>
      %c3_118 = arith.constant 3 : index
      %c0_119 = arith.constant 0 : index
      %c0_120 = arith.constant 0 : index
      %178 = vector.load %arg17[%c3_118, %c0_119, %c0_120] : memref<4x16x8xbf16, #tpu.memory_space<vmem>>, vector<1x16x8xbf16>
      %179 = vector.shape_cast %178 : vector<1x16x8xbf16> to vector<16x8xbf16>
      %180 = vector.shape_cast %177 : vector<16x8xbf16> to vector<1x16x8xbf16>
      tpu.vector_store %arg17[%c3_118, %c0_119, %c0_120], %180 {strides = array<i32>} : memref<4x16x8xbf16, #tpu.memory_space<vmem>>, vector<1x16x8xbf16>,
    } else {
    }
    %c16_i32 = arith.constant 16 : i32
    %3 = arith.muli %arg1, %c16_i32 : i32
    %4 = tpu.assume_multiple %3, 16 : i32
    %c0 = arith.constant 0 : index
    %5 = arith.index_cast %4 : i32 to index
    %c0_1 = arith.constant 0 : index
    %6 = vector.load %arg2[%c0, %5, %c0_1] : memref<1x16x32xf32, #tpu.memory_space<vmem>>, vector<1x16x32xf32>
    %7 = vector.shape_cast %6 : vector<1x16x32xf32> to vector<16x32xf32>
    %c0_2 = arith.constant 0 : index
    %8 = arith.index_cast %4 : i32 to index
    %c0_3 = arith.constant 0 : index
    %9 = vector.load %arg3[%c0_2, %8, %c0_3] : memref<1x16x32xf32, #tpu.memory_space<vmem>>, vector<1x16x32xf32>
    %10 = vector.shape_cast %9 : vector<1x16x32xf32> to vector<16x32xf32>
    %11 = arith.addf %7, %10 : vector<16x32xf32>
    %12 = arith.truncf %11 : vector<16x32xf32> to vector<16x32xbf16>
    %cst = arith.constant 0.000000e+00 : f32
    %13 = vector.broadcast %cst : f32 to vector<16x32xf32>
    %c0_i32_4 = arith.constant 0 : i32
    %c4_i32 = arith.constant 4 : i32
    %14 = arith.addi %c0_i32_4, %c4_i32 : i32
    %c1_i32 = arith.constant 1 : i32
    %15 = scf.for %arg18 = %c0_i32_4 to %14 step %c1_i32 iter_args(%arg19 = %13) -> (vector<16x32xf32>)  : i32 {
      %86 = arith.index_cast %arg18 : i32 to index
      %c0_35 = arith.constant 0 : index
      %c0_36 = arith.constant 0 : index
      %87 = vector.load %arg4[%86, %c0_35, %c0_36] : memref<4x32x8xbf16, #tpu.memory_space<vmem>>, vector<1x32x8xbf16>
      %88 = vector.shape_cast %87 : vector<1x32x8xbf16> to vector<32x8xbf16>
      %cst_37 = arith.constant dense<0.000000e+00> : vector<16x8xf32>
      %89 = tpu.matmul %12, %88, %cst_37 {dimension_numbers = #tpu.dot_dimension_numbers<[1], [0], [0], [1], [0, 0, 1, 1], [], []>} : vector<16x32xbf16>, vector<32x8xbf16>, vector<16x8xf32> -> vector<16x8xf32>
      %90 = arith.index_cast %arg18 : i32 to index
      %c0_38 = arith.constant 0 : index
      %c0_39 = arith.constant 0 : index
      %91 = vector.load %arg10[%90, %c0_38, %c0_39] : memref<4x1x8xf32, #tpu.memory_space<vmem>>, vector<1x1x8xf32>
      %92 = vector.shape_cast %91 : vector<1x1x8xf32> to vector<1x8xf32>
      %93 = vector.broadcast %92 : vector<1x8xf32> to vector<16x8xf32>
      %94 = arith.addf %89, %93 : vector<16x8xf32>
      %95 = arith.truncf %94 : vector<16x8xf32> to vector<16x8xbf16>
      %96 = arith.index_cast %arg18 : i32 to index
      %c0_40 = arith.constant 0 : index
      %c0_41 = arith.constant 0 : index
      %97 = vector.load %arg16[%96, %c0_40, %c0_41] : memref<4x16x8xbf16, #tpu.memory_space<vmem>>, vector<1x16x8xbf16>
      %98 = vector.shape_cast %97 : vector<1x16x8xbf16> to vector<16x8xbf16>
      %cst_42 = arith.constant dense<0.000000e+00> : vector<16x16xf32>
      %99 = tpu.matmul %95, %98, %cst_42 {dimension_numbers = #tpu.dot_dimension_numbers<[1], [1], [0], [0], [0, 0, 1, 0], [], []>} : vector<16x8xbf16>, vector<16x8xbf16>, vector<16x16xf32> -> vector<16x16xf32>
      %cst_43 = arith.constant dense<0xFF800000> : vector<16xf32>
      %100 = vector.multi_reduction <maximumf>, %99, %cst_43 [1] : vector<16x16xf32> to vector<16xf32>
      %101 = vector.shape_cast %100 : vector<16xf32> to vector<16x1xf32>
      %102 = vector.broadcast %101 : vector<16x1xf32> to vector<16x16xf32>
      %103 = arith.subf %99, %102 : vector<16x16xf32>
      %104 = math.exp %103 : vector<16x16xf32>
      %cst_44 = arith.constant dense<0.000000e+00> : vector<16xf32>
      %105 = vector.multi_reduction <add>, %104, %cst_44 [1] : vector<16x16xf32> to vector<16xf32>
      %106 = vector.shape_cast %105 : vector<16xf32> to vector<16x1xf32>
      %107 = tpu.reciprocal %106 {approx = true} : vector<16x1xf32> -> vector<16x1xf32>
      %108 = vector.broadcast %107 : vector<16x1xf32> to vector<16x16xf32>
      %109 = arith.mulf %104, %108 : vector<16x16xf32>
      %110 = arith.truncf %109 : vector<16x16xf32> to vector<16x16xbf16>
      %111 = arith.index_cast %arg18 : i32 to index
      %c0_45 = arith.constant 0 : index
      %c0_46 = arith.constant 0 : index
      %112 = vector.load %arg17[%111, %c0_45, %c0_46] : memref<4x16x8xbf16, #tpu.memory_space<vmem>>, vector<1x16x8xbf16>
      %113 = vector.shape_cast %112 : vector<1x16x8xbf16> to vector<16x8xbf16>
      %cst_47 = arith.constant dense<0.000000e+00> : vector<16x8xf32>
      %114 = tpu.matmul %110, %113, %cst_47 {dimension_numbers = #tpu.dot_dimension_numbers<[1], [0], [0], [1], [0, 0, 1, 1], [], []>} : vector<16x16xbf16>, vector<16x8xbf16>, vector<16x8xf32> -> vector<16x8xf32>
      %115 = arith.truncf %114 : vector<16x8xf32> to vector<16x8xbf16>
      %116 = arith.index_cast %arg18 : i32 to index
      %c0_48 = arith.constant 0 : index
      %c0_49 = arith.constant 0 : index
      %117 = vector.load %arg7[%116, %c0_48, %c0_49] : memref<4x8x32xbf16, #tpu.memory_space<vmem>>, vector<1x8x32xbf16>
      %118 = vector.shape_cast %117 : vector<1x8x32xbf16> to vector<8x32xbf16>
      %cst_50 = arith.constant dense<0.000000e+00> : vector<16x32xf32>
      %119 = tpu.matmul %115, %118, %cst_50 {dimension_numbers = #tpu.dot_dimension_numbers<[1], [0], [0], [1], [0, 0, 1, 1], [], []>} : vector<16x8xbf16>, vector<8x32xbf16>, vector<16x32xf32> -> vector<16x32xf32>
      %120 = arith.addf %arg19, %119 : vector<16x32xf32>
      scf.yield %120 : vector<16x32xf32>
    }
    %c4_i32_5 = arith.constant 4 : i32
    %c0_6 = arith.constant 0 : index
    %c0_7 = arith.constant 0 : index
    %16 = vector.load %arg14[%c0_6, %c0_7] : memref<6x32xf32, #tpu.memory_space<vmem>>, vector<1x32xf32>
    %17 = vector.broadcast %16 : vector<1x32xf32> to vector<16x32xf32>
    %18 = arith.addf %15, %17 : vector<16x32xf32>
    %19 = arith.addf %7, %18 : vector<16x32xf32>
    %cst_8 = arith.constant dense<0.000000e+00> : vector<16xf32>
    %20 = vector.multi_reduction <add>, %19, %cst_8 [1] : vector<16x32xf32> to vector<16xf32>
    %21 = vector.shape_cast %20 : vector<16xf32> to vector<16x1xf32>
    %cst_9 = arith.constant 3.200000e+01 : f32
    %22 = vector.broadcast %cst_9 : f32 to vector<16x1xf32>
    %23 = arith.divf %21, %22 : vector<16x1xf32>
    %24 = vector.broadcast %23 : vector<16x1xf32> to vector<16x32xf32>
    %25 = arith.subf %19, %24 : vector<16x32xf32>
    %26 = arith.mulf %25, %25 : vector<16x32xf32>
    %cst_10 = arith.constant dense<0.000000e+00> : vector<16xf32>
    %27 = vector.multi_reduction <add>, %26, %cst_10 [1] : vector<16x32xf32> to vector<16xf32>
    %28 = vector.shape_cast %27 : vector<16xf32> to vector<16x1xf32>
    %cst_11 = arith.constant 3.200000e+01 : f32
    %29 = vector.broadcast %cst_11 : f32 to vector<16x1xf32>
    %30 = arith.divf %28, %29 : vector<16x1xf32>
    %31 = vector.broadcast %23 : vector<16x1xf32> to vector<16x32xf32>
    %32 = arith.subf %19, %31 : vector<16x32xf32>
    %cst_12 = arith.constant 9.99999974E-6 : f32
    %33 = vector.broadcast %cst_12 : f32 to vector<16x1xf32>
    %34 = arith.addf %30, %33 : vector<16x1xf32>
    %35 = math.rsqrt %34 : vector<16x1xf32>
    %36 = vector.broadcast %35 : vector<16x1xf32> to vector<16x32xf32>
    %37 = arith.mulf %32, %36 : vector<16x32xf32>
    %c2 = arith.constant 2 : index
    %c0_13 = arith.constant 0 : index
    %38 = vector.load %arg14[%c2, %c0_13] : memref<6x32xf32, #tpu.memory_space<vmem>>, vector<1x32xf32>
    %39 = vector.broadcast %38 : vector<1x32xf32> to vector<16x32xf32>
    %40 = arith.mulf %37, %39 : vector<16x32xf32>
    %c3 = arith.constant 3 : index
    %c0_14 = arith.constant 0 : index
    %41 = vector.load %arg14[%c3, %c0_14] : memref<6x32xf32, #tpu.memory_space<vmem>>, vector<1x32xf32>
    %42 = vector.broadcast %41 : vector<1x32xf32> to vector<16x32xf32>
    %43 = arith.addf %40, %42 : vector<16x32xf32>
    %44 = arith.truncf %43 : vector<16x32xf32> to vector<16x32xbf16>
    %c0_15 = arith.constant 0 : index
    %c0_16 = arith.constant 0 : index
    %45 = vector.load %arg8[%c0_15, %c0_16] : memref<32x64xbf16, #tpu.memory_space<vmem>>, vector<32x64xbf16>
    %cst_17 = arith.constant dense<0.000000e+00> : vector<16x64xf32>
    %46 = tpu.matmul %44, %45, %cst_17 {dimension_numbers = #tpu.dot_dimension_numbers<[1], [0], [0], [1], [0, 0, 1, 1], [], []>} : vector<16x32xbf16>, vector<32x64xbf16>, vector<16x64xf32> -> vector<16x64xf32>
    %c0_18 = arith.constant 0 : index
    %c0_19 = arith.constant 0 : index
    %47 = vector.load %arg13[%c0_18, %c0_19] : memref<1x64xf32, #tpu.memory_space<vmem>>, vector<1x64xf32>
    %48 = vector.broadcast %47 : vector<1x64xf32> to vector<16x64xf32>
    %49 = arith.addf %46, %48 : vector<16x64xf32>
    %cst_20 = arith.constant 0.000000e+00 : f32
    %50 = vector.broadcast %cst_20 : f32 to vector<16x64xf32>
    %51 = arith.maximumf %49, %50 : vector<16x64xf32>
    %52 = arith.truncf %51 : vector<16x64xf32> to vector<16x64xbf16>
    %c0_21 = arith.constant 0 : index
    %c0_22 = arith.constant 0 : index
    %53 = vector.load %arg9[%c0_21, %c0_22] : memref<64x32xbf16, #tpu.memory_space<vmem>>, vector<64x32xbf16>
    %cst_23 = arith.constant dense<0.000000e+00> : vector<16x32xf32>
    %54 = tpu.matmul %52, %53, %cst_23 {dimension_numbers = #tpu.dot_dimension_numbers<[1], [0], [0], [1], [0, 0, 1, 1], [], []>} : vector<16x64xbf16>, vector<64x32xbf16>, vector<16x32xf32> -> vector<16x32xf32>
    %c1 = arith.constant 1 : index
    %c0_24 = arith.constant 0 : index
    %55 = vector.load %arg14[%c1, %c0_24] : memref<6x32xf32, #tpu.memory_space<vmem>>, vector<1x32xf32>
    %56 = vector.broadcast %55 : vector<1x32xf32> to vector<16x32xf32>
    %57 = arith.addf %54, %56 : vector<16x32xf32>
    %58 = arith.addf %43, %57 : vector<16x32xf32>
    %cst_25 = arith.constant dense<0.000000e+00> : vector<16xf32>
    %59 = vector.multi_reduction <add>, %58, %cst_25 [1] : vector<16x32xf32> to vector<16xf32>
    %60 = vector.shape_cast %59 : vector<16xf32> to vector<16x1xf32>
    %cst_26 = arith.constant 3.200000e+01 : f32
    %61 = vector.broadcast %cst_26 : f32 to vector<16x1xf32>
    %62 = arith.divf %60, %61 : vector<16x1xf32>
    %63 = vector.broadcast %62 : vector<16x1xf32> to vector<16x32xf32>
    %64 = arith.subf %58, %63 : vector<16x32xf32>
    %65 = arith.mulf %64, %64 : vector<16x32xf32>
    %cst_27 = arith.constant dense<0.000000e+00> : vector<16xf32>
    %66 = vector.multi_reduction <add>, %65, %cst_27 [1] : vector<16x32xf32> to vector<16xf32>
    %67 = vector.shape_cast %66 : vector<16xf32> to vector<16x1xf32>
    %cst_28 = arith.constant 3.200000e+01 : f32
    %68 = vector.broadcast %cst_28 : f32 to vector<16x1xf32>
    %69 = arith.divf %67, %68 : vector<16x1xf32>
    %70 = vector.broadcast %62 : vector<16x1xf32> to vector<16x32xf32>
    %71 = arith.subf %58, %70 : vector<16x32xf32>
    %cst_29 = arith.constant 9.99999974E-6 : f32
    %72 = vector.broadcast %cst_29 : f32 to vector<16x1xf32>
    %73 = arith.addf %69, %72 : vector<16x1xf32>
    %74 = math.rsqrt %73 : vector<16x1xf32>
    %75 = vector.broadcast %74 : vector<16x1xf32> to vector<16x32xf32>
    %76 = arith.mulf %71, %75 : vector<16x32xf32>
    %c4 = arith.constant 4 : index
    %c0_30 = arith.constant 0 : index
    %77 = vector.load %arg14[%c4, %c0_30] : memref<6x32xf32, #tpu.memory_space<vmem>>, vector<1x32xf32>
    %78 = vector.broadcast %77 : vector<1x32xf32> to vector<16x32xf32>
    %79 = arith.mulf %76, %78 : vector<16x32xf32>
    %c5 = arith.constant 5 : index
    %c0_31 = arith.constant 0 : index
    %80 = vector.load %arg14[%c5, %c0_31] : memref<6x32xf32, #tpu.memory_space<vmem>>, vector<1x32xf32>
    %81 = vector.broadcast %80 : vector<1x32xf32> to vector<16x32xf32>
    %82 = arith.addf %79, %81 : vector<16x32xf32>
    %c0_32 = arith.constant 0 : index
    %c0_33 = arith.constant 0 : index
    %c0_34 = arith.constant 0 : index
    %83 = vector.load %arg15[%c0_32, %c0_33, %c0_34] : memref<1x16x32xf32, #tpu.memory_space<vmem>>, vector<1x16x32xf32>
    %84 = vector.shape_cast %83 : vector<1x16x32xf32> to vector<16x32xf32>
    %85 = vector.shape_cast %82 : vector<16x32xf32> to vector<1x16x32xf32>
    tpu.vector_store %arg15[%c0_32, %c0_33, %c0_34], %85 {strides = array<i32>} : memref<1x16x32xf32, #tpu.memory_space<vmem>>, vector<1x16x32xf32>,
    return
  }
  func.func @transform_0(%arg0: i32, %arg1: i32) -> (i32, i32, i32) {
    %c0_i32 = arith.constant 0 : i32
    %c0_i32_0 = arith.constant 0 : i32
    %c0_i32_1 = arith.constant 0 : i32
    return %arg0, %c0_i32, %c0_i32_0 : i32, i32, i32
  }
  func.func @transform_1(%arg0: i32, %arg1: i32) -> (i32, i32, i32) {
    %c0_i32 = arith.constant 0 : i32
    %c0_i32_0 = arith.constant 0 : i32
    %c0_i32_1 = arith.constant 0 : i32
    return %arg0, %c0_i32, %c0_i32_0 : i32, i32, i32
  }
  func.func @transform_2(%arg0: i32, %arg1: i32) -> (i32, i32, i32) {
    %c0_i32 = arith.constant 0 : i32
    %c0_i32_0 = arith.constant 0 : i32
    %c0_i32_1 = arith.constant 0 : i32
    %c0_i32_2 = arith.constant 0 : i32
    return %c0_i32, %c0_i32_0, %c0_i32_1 : i32, i32, i32
  }
  func.func @transform_3(%arg0: i32, %arg1: i32) -> (i32, i32, i32) {
    %c0_i32 = arith.constant 0 : i32
    %c0_i32_0 = arith.constant 0 : i32
    %c0_i32_1 = arith.constant 0 : i32
    %c0_i32_2 = arith.constant 0 : i32
    return %c0_i32, %c0_i32_0, %c0_i32_1 : i32, i32, i32
  }
  func.func @transform_4(%arg0: i32, %arg1: i32) -> (i32, i32, i32) {
    %c0_i32 = arith.constant 0 : i32
    %c0_i32_0 = arith.constant 0 : i32
    %c0_i32_1 = arith.constant 0 : i32
    %c0_i32_2 = arith.constant 0 : i32
    return %c0_i32, %c0_i32_0, %c0_i32_1 : i32, i32, i32
  }
  func.func @transform_5(%arg0: i32, %arg1: i32) -> (i32, i32, i32) {
    %c0_i32 = arith.constant 0 : i32
    %c0_i32_0 = arith.constant 0 : i32
    %c0_i32_1 = arith.constant 0 : i32
    %c0_i32_2 = arith.constant 0 : i32
    return %c0_i32, %c0_i32_0, %c0_i32_1 : i32, i32, i32
  }
  func.func @transform_6(%arg0: i32, %arg1: i32) -> (i32, i32) {
    %c0_i32 = arith.constant 0 : i32
    %c0_i32_0 = arith.constant 0 : i32
    %c0_i32_1 = arith.constant 0 : i32
    return %c0_i32, %c0_i32_0 : i32, i32
  }
  func.func @transform_7(%arg0: i32, %arg1: i32) -> (i32, i32) {
    %c0_i32 = arith.constant 0 : i32
    %c0_i32_0 = arith.constant 0 : i32
    %c0_i32_1 = arith.constant 0 : i32
    return %c0_i32, %c0_i32_0 : i32, i32
  }
  func.func @transform_8(%arg0: i32, %arg1: i32) -> (i32, i32, i32) {
    %c0_i32 = arith.constant 0 : i32
    %c0_i32_0 = arith.constant 0 : i32
    %c0_i32_1 = arith.constant 0 : i32
    %c0_i32_2 = arith.constant 0 : i32
    return %c0_i32, %c0_i32_0, %c0_i32_1 : i32, i32, i32
  }
  func.func @transform_9(%arg0: i32, %arg1: i32) -> (i32, i32, i32) {
    %c0_i32 = arith.constant 0 : i32
    %c0_i32_0 = arith.constant 0 : i32
    %c0_i32_1 = arith.constant 0 : i32
    %c0_i32_2 = arith.constant 0 : i32
    return %c0_i32, %c0_i32_0, %c0_i32_1 : i32, i32, i32
  }
  func.func @transform_10(%arg0: i32, %arg1: i32) -> (i32, i32, i32) {
    %c0_i32 = arith.constant 0 : i32
    %c0_i32_0 = arith.constant 0 : i32
    %c0_i32_1 = arith.constant 0 : i32
    %c0_i32_2 = arith.constant 0 : i32
    return %c0_i32, %c0_i32_0, %c0_i32_1 : i32, i32, i32
  }
  func.func @transform_11(%arg0: i32, %arg1: i32) -> (i32, i32) {
    %c0_i32 = arith.constant 0 : i32
    %c0_i32_0 = arith.constant 0 : i32
    %c0_i32_1 = arith.constant 0 : i32
    return %c0_i32, %c0_i32_0 : i32, i32
  }
  func.func @transform_12(%arg0: i32, %arg1: i32) -> (i32, i32) {
    %c0_i32 = arith.constant 0 : i32
    %c0_i32_0 = arith.constant 0 : i32
    %c0_i32_1 = arith.constant 0 : i32
    return %c0_i32, %c0_i32_0 : i32, i32
  }
  func.func @transform_13(%arg0: i32, %arg1: i32) -> (i32, i32, i32) {
    %c0_i32 = arith.constant 0 : i32
    %c0_i32_0 = arith.constant 0 : i32
    return %arg0, %arg1, %c0_i32 : i32, i32, i32
  }
}

</mosaic_0001>

<bundles_post_ra>
// kernel: transformer_encoder_layer.1
= control target key start
LH: loop header
LB: loop body
LE: loop exit
PB: predicated region body
PF: predicated region fallthrough
CT: control target
= control target key end

     0   :  { %s2154_s25 = smov 0   ;;  %s2156_s26 = smov 0   ;;  %s2441_s0 = inlined_call_operand.vmem [shape: f32[2,16,32], index: 0, kind: input, shape index: {}]   ;;  %s2442_s1 = inlined_call_operand.vmem [shape: f32[2,16,32], index: 1, kind: input, shape index: {}]   ;;  %s2443_s2 = inlined_call_operand.vmem [shape: bf16[4,32,8], index: 2, kind: input, shape index: {}]   ;;  %s2444_s3 = inlined_call_operand.vmem [shape: bf16[4,32,8], index: 3, kind: input, shape index: {}]   ;;  %s2445_s4 = inlined_call_operand.vmem [shape: bf16[4,32,8], index: 4, kind: input, shape index: {}]   ;;  %s2446_s5 = inlined_call_operand.vmem [shape: bf16[4,8,32], index: 5, kind: input, shape index: {}]   ;;  %s2447_s6 = inlined_call_operand.vmem [shape: bf16[32,64], index: 6, kind: input, shape index: {}]   ;;  %s2448_s7 = inlined_call_operand.vmem [shape: bf16[64,32], index: 7, kind: input, shape index: {}]   ;;  %s2449_s8 = inlined_call_operand.vmem [shape: f32[4,1,8], index: 8, kind: input, shape index: {}]   ;;  %s2450_s9 = inlined_call_operand.vmem [shape: f32[4,1,8], index: 9, kind: input, shape index: {}]   ;;  %s2451_s10 = inlined_call_operand.vmem [shape: f32[4,1,8], index: 10, kind: input, shape index: {}]   ;;  %s2452_s11 = inlined_call_operand.vmem [shape: f32[1,64], index: 11, kind: input, shape index: {}]   ;;  %s2453_s12 = inlined_call_operand.vmem [shape: f32[6,32], index: 12, kind: input, shape index: {}]   ;;  %s2454_s13 = inlined_call_operand.vmem [shape: f32[2,16,32], index: 13, kind: output, shape index: {}]  }
   0x1   :  { %s2158_s27 = smov 0  }
   0x2 LB: > { %s35_s28 = sadd.s32 1, %s2062_s26  ;;  %p1687_p0 = scmp.ge.s32.totalorder %s2066_s27, 1  ;;  %s2066_s27 = sphi %s2158_s27, %s23_s27   ;;  %s2062_s26 = sphi %s2156_s26, %s2458_s26   ;;  %s2058_s25 = sphi %s2154_s25, %s2457_s25  }
   0x3   : > { %p37_p1 = scmp.ge.s32.totalorder %s35_s28, 2  ;;  %p411_p2 = scmp.lt.s32.totalorder %s2066_s27, 3 }
   0x5   : > { %s2460_s28 = smov (%p37_p1, %s35_s28), 0  ;;  %p412_p3 = pnand %p1687_p0, %p411_p2 }
   0x6   : > { %v1992_v0 = vld [vmem:[%s2444_s3] sm:$0xff] (!%p412_p3)   ;;  %v2080_v1 = vmov (!%p412_p3), 0.0   ;;  %v1994_v3 = vld [vmem:[%s2444_s3 + $0x8] sm:$0xff] (!%p412_p3)   ;;  %vm2081_vm0 = vmmov (!%p412_p3), 0   ;;  %p464_p4 = scmp.lt.s32.totalorder (!%p412_p3), %s2058_s25, 1  ;;  %v1997_v5 = vld [vmem:[%s2445_s4 + $0x10] sm:$0xff] (!%p412_p3)  }
   0x7   : > { %415 = sbr.rel (%p412_p3) target bundleno = 2531 (0x9e3), region = 72  ;;  %1830 = vmatprep.subr.bf16.mxu0 (!%p412_p3), %v2080_v1  ;;  %1838 = vmatprep.subr.bf16.mxu1 (!%p412_p3), %v2080_v1  ;;  %v1993_v2 = vld [vmem:[%s2445_s4] sm:$0xff] (!%p412_p3)   ;;  %v1995_v4 = vld [vmem:[%s2445_s4 + $0x8] sm:$0xff] (!%p412_p3)   ;;  %vm520_vm1 = vcmask (!%p412_p3), 261120   ;;  %v1996_v13 = vld [vmem:[%s2444_s3 + $0x10] sm:$0xff] (!%p412_p3)   ;;  %vm633_vm2 = vcmask (!%p412_p3), 64512  }
   0x8   : > { %1831 = vmatpush3.bf16.msra.mxu0 (!%p412_p3), %v1992_v0  ;;  %1842 = vmatprep.mubr.msk.bf16.mxu1 (!%p412_p3), %vm2081_vm0, %v2080_v1  ;;  %v1999_v15 = vld [vmem:[%s2445_s4 + $0x18] sm:$0xff] (!%p412_p3)   ;;  %v2001_v17 = vld [vmem:[%s2445_s4 + $0x20] sm:$0xff] (!%p412_p3)   ;;  %v2003_v19 = vld [vmem:[%s2445_s4 + $0x28] sm:$0xff] (!%p412_p3)  }
   0x9   : > { %1839 = vmatpush3.bf16.msra.mxu1 (!%p412_p3), %v1993_v2  ;;  %1832 = vmatprep.subr.bf16.mxu0 (!%p412_p3), %v2080_v1  ;;  %v1998_v16 = vld [vmem:[%s2444_s3 + $0x18] sm:$0xff] (!%p412_p3)   ;;  %v2000_v18 = vld [vmem:[%s2444_s3 + $0x20] sm:$0xff] (!%p412_p3)   ;;  %v2002_v20 = vld [vmem:[%s2444_s3 + $0x28] sm:$0xff] (!%p412_p3)  }
   0xa   : > { %1840 = vmatprep.subr.bf16.mxu1 (!%p412_p3), %v2080_v1  ;;  %1834 = vmatprep.mubr.msk.bf16.mxu0 (!%p412_p3), %vm2081_vm0, %v2080_v1  ;;  %v2005_v21 = vld [vmem:[%s2445_s4 + $0x30] sm:$0xff] (!%p412_p3)   ;;  %v2007_v23 = vld [vmem:[%s2445_s4 + $0x38] sm:$0xff] (!%p412_p3)   ;;  %v1698_v25 = vld [vmem:[%s2451_s10] ss:$0 sm:$0xff] (!%p412_p3) }
   0xb   : > { %v2004_v22 = vld [vmem:[%s2444_s3 + $0x30] sm:$0xff] (!%p412_p3)   ;;  %v2006_v24 = vld [vmem:[%s2444_s3 + $0x38] sm:$0xff] (!%p412_p3)   ;;  %v1694_v30 = vld [vmem:[%s2450_s9] ss:$0 sm:$0xff] (!%p412_p3) }
   0xc   : > { %1833 = vmatpush3.bf16.msra.mxu0 (!%p412_p3), %v1994_v3  ;;  %v1716_v40 = vld [vmem:[%s2451_s10 + $0x1] ss:$0 sm:$0xff] (!%p412_p3)  ;;  %v1734_v56 = vld [vmem:[%s2451_s10 + $0x2] ss:$0 sm:$0xff] (!%p412_p3) }
   0xd   : > { %1841 = vmatpush3.bf16.msra.mxu1 (!%p412_p3), %v1995_v4  ;;  %1846 = vmatprep.subr.bf16.mxu0 (!%p412_p3), %v2080_v1  ;;  %v1707_v46 = vld [vmem:[%s2450_s9 + $0x1] ss:$0 sm:$0xff] (!%p412_p3)  ;;  %v1725_v62 = vld [vmem:[%s2450_s9 + $0x2] ss:$0 sm:$0xff] (!%p412_p3) }
   0xe   : > { %s2462_s25 = smov (!%p464_p4, %s2058_s25), 1  ;;  %1854 = vmatprep.subr.bf16.mxu1 %v2080_v1 }
   0xf   : > { %s1785_s20 = sshll.u32 %s2462_s25, 4 }
  0x10   : > { %s468_s23 = scalar_lea.vmem %s2441_s0, %s1785_s20  ;;  %s2198_s30 = scalar_lea.vmem %s2454_s13, %s1785_s20 }
  0x11   : > { %v2204_v6 = vld [vmem:[%s468_s23] sm:$0xff]  ;;  %v2206_v7 = vld [vmem:[%s468_s23 + $0x8] sm:$0xff]  ;;  %s473_s17 = scalar_lea.vmem %s2442_s1, %s1785_s20 }
  0x12   : > { %v496_v8 = vpack.c.bf16 %v2206_v7, %v2204_v6  ;;  %v491_v9 = vld [vmem:[%s473_s17] sm:$0xff]  ;;  %v492_v10 = vld [vmem:[%s473_s17 + $0x8] sm:$0xff]  ;;  %s2321_s17 = smov 0  }
  0x13   : > { %v493_v11 = vadd.f32 %v491_v9, %v2204_v6  ;;  %v494_v12 = vadd.f32 %v492_v10, %v2206_v7 }
  0x14   : > { %1843 = vmatmul.mubr.msk.bf16.vlgmr.msra.gmra.mrb[0].mxu1 %vm520_vm1, %v496_v8 }
  0x15   : > { %v2220_v14 = vpack.c.bf16 %v494_v12, %v493_v11  ;;  %1855 = vmatpush3.bf16.msra.mxu1 %v1997_v5  ;;  %1858 = vmatprep.mubr.msk.bf16.mxu1 %vm2081_vm0, %v2080_v1  ;;  %v1752_v11 = vld [vmem:[%s2451_s10 + $0x3] ss:$0 sm:$0xff] }
  0x16   : > { %1856 = vmatprep.subr.bf16.mxu1 %v2080_v1 }
  0x17   : > { %1835 = vmatmul.mubr.msk.bf16.vlgmr.msra.gmra.mrb[0].mxu0 %vm520_vm1, %v2220_v14 }
  0x18   : > { %1847 = vmatpush3.bf16.msra.mxu0 %v1996_v13  ;;  %1850 = vmatprep.mubr.msk.bf16.mxu0 %vm2081_vm0, %v2080_v1 }
  0x19   : > { %1848 = vmatprep.subr.bf16.mxu0 %v2080_v1  ;;  %1857 = vmatpush3.bf16.msra.mxu1 %v1999_v15 }
  0x1a   : > { %1870 = vmatprep.subr.bf16.mxu1 %v2080_v1 }
  0x1c   : > { %1849 = vmatpush3.bf16.msra.mxu0 %v1998_v16  ;;  %1859 = vmatmul.mubr.msk.bf16.vlgmr.msra.gmra.mrb[4].mxu1 %vm520_vm1, %v496_v8 }
  0x1d   : > { %1862 = vmatprep.subr.bf16.mxu0 %v2080_v1  ;;  %1871 = vmatpush3.bf16.msra.mxu1 %v2001_v17 }
  0x1e   : > { %1872 = vmatprep.subr.bf16.mxu1 %v2080_v1  ;;  %1874 = vmatprep.mubr.msk.bf16.mxu1 %vm2081_vm0, %v2080_v1 }
  0x1f   : > { %1851 = vmatmul.mubr.msk.bf16.vlgmr.msra.gmra.mrb[4].mxu0 %vm520_vm1, %v2220_v14 }
  0x20   : > { %1863 = vmatpush3.bf16.msra.mxu0 %v2000_v18  ;;  %1866 = vmatprep.mubr.msk.bf16.mxu0 %vm2081_vm0, %v2080_v1  ;;  %v1743_v18 = vld [vmem:[%s2450_s9 + $0x3] ss:$0 sm:$0xff] }
  0x21   : > { %1864 = vmatprep.subr.bf16.mxu0 %v2080_v1  ;;  %1873 = vmatpush3.bf16.msra.mxu1 %v2003_v19 }
  0x22   : > { %1886 = vmatprep.subr.bf16.mxu1 %v2080_v1 }
  0x24   : > { %1865 = vmatpush3.bf16.msra.mxu0 %v2002_v20  ;;  %1875 = vmatmul.mubr.msk.bf16.vlgmr.msra.gmra.mrb[8].mxu1 %vm520_vm1, %v496_v8 }
  0x25   : > { %1878 = vmatprep.subr.bf16.mxu0 %v2080_v1  ;;  %1887 = vmatpush3.bf16.msra.mxu1 %v2005_v21 }
  0x26   : > { %1888 = vmatprep.subr.bf16.mxu1 %v2080_v1  ;;  %1890 = vmatprep.mubr.msk.bf16.mxu1 %vm2081_vm0, %v2080_v1 }
  0x27   : > { %1867 = vmatmul.mubr.msk.bf16.vlgmr.msra.gmra.mrb[8].mxu0 %vm520_vm1, %v2220_v14 }
  0x28   : > { %1879 = vmatpush3.bf16.msra.mxu0 %v2004_v22  ;;  %1882 = vmatprep.mubr.msk.bf16.mxu0 %vm2081_vm0, %v2080_v1 }
  0x29   : > { %1880 = vmatprep.subr.bf16.mxu0 %v2080_v1  ;;  %1889 = vmatpush3.bf16.msra.mxu1 %v2007_v23 }
  0x2c   : > { %1881 = vmatpush3.bf16.msra.mxu0 %v2006_v24  ;;  %1891 = vmatmul.mubr.msk.bf16.vlgmr.msra.gmra.mrb[12].mxu1 %vm520_vm1, %v496_v8 }
  0x2f   : > { %1883 = vmatmul.mubr.msk.bf16.vlgmr.msra.gmra.mrb[12].mxu0 %vm520_vm1, %v2220_v14 }
  0xe7   : > { %v625_v26 = vpop.f32.mrb[0].mxu1 }
  0xe8   : > { %v626_v27 = vadd.f32 %v1698_v25, %v625_v26  ;;  %v1844_v28 = vpop.f32.mrb[1].mxu1 }
  0xe9   : > { %v628_v29 = vpop.f32.mrb[2].mxu1 }
  0xea   : > { %v558_v31 = vpop.f32.mrb[0].mxu0  ;;  %v629_v32 = vadd.f32 %v1698_v25, %v628_v29  ;;  %v1845_v33 = vpop.f32.mrb[3].mxu1  ;;  %v2317_v29 = vmov 0.0  }
  0xeb   : > { %v1836_v34 = vpop.f32.mrb[1].mxu0  ;;  %v559_v37 = vadd.f32 %v1694_v30, %v558_v31 }
  0xec   : > { %v635_v35 = vpack.c.bf16 %v629_v32, %v626_v27  ;;  %v561_v36 = vpop.f32.mrb[2].mxu0 }
  0xed   : > { %v562_v38 = vadd.f32 %v1694_v30, %v561_v36  ;;  %v1837_v39 = vpop.f32.mrb[3].mxu0  ;;  %v2319_v30 = vmov 0.0  }
  0xee   : > { %636 = vst.msk [vmem:[#allocation3] sm:$0xff] %vm633_vm2, %v635_v35 }
  0xef   : > { %v632_v41 = vpack.c.bf16 %v562_v38, %v559_v37  ;;  %v762_v42 = vpop.f32.mrb[4].mxu1 }
  0xf0   : > { %v763_v43 = vadd.f32 %v1716_v40, %v762_v42  ;;  %v1860_v44 = vpop.f32.mrb[5].mxu1 }
  0xf1   : > { %634 = vst.msk [vmem:[#allocation2] sm:$0xff] %vm633_vm2, %v632_v41  ;;  %v765_v45 = vpop.f32.mrb[6].mxu1 }
  0xf2   : > { %v696_v47 = vpop.f32.mrb[4].mxu0  ;;  %v766_v48 = vadd.f32 %v1716_v40, %v765_v45  ;;  %v1861_v49 = vpop.f32.mrb[7].mxu1 }
  0xf3   : > { %v1852_v50 = vpop.f32.mrb[5].mxu0  ;;  %v697_v53 = vadd.f32 %v1707_v46, %v696_v47 }
  0xf4   : > { %v772_v51 = vpack.c.bf16 %v766_v48, %v763_v43  ;;  %v699_v52 = vpop.f32.mrb[6].mxu0 }
  0xf5   : > { %v700_v54 = vadd.f32 %v1707_v46, %v699_v52  ;;  %v1853_v55 = vpop.f32.mrb[7].mxu0 }
  0xf6   : > { %774 = vst.msk [vmem:[#allocation3 + $0x8] sm:$0xff] %vm633_vm2, %v772_v51 }
  0xf7   : > { %v769_v57 = vpack.c.bf16 %v700_v54, %v697_v53  ;;  %v900_v58 = vpop.f32.mrb[8].mxu1 }
  0xf8   : > { %v901_v59 = vadd.f32 %v1734_v56, %v900_v58  ;;  %v1876_v60 = vpop.f32.mrb[9].mxu1 }
  0xf9   : > { %771 = vst.msk [vmem:[#allocation2 + $0x8] sm:$0xff] %vm633_vm2, %v769_v57  ;;  %v903_v61 = vpop.f32.mrb[10].mxu1 }
  0xfa   : > { %v834_v63 = vpop.f32.mrb[8].mxu0  ;;  %v904_v0 = vadd.f32 %v1734_v56, %v903_v61  ;;  %v1877_v2 = vpop.f32.mrb[11].mxu1 }
  0xfb   : > { %v1868_v3 = vpop.f32.mrb[9].mxu0  ;;  %v835_v8 = vadd.f32 %v1725_v62, %v834_v63 }
  0xfc   : > { %v910_v4 = vpack.c.bf16 %v904_v0, %v901_v59  ;;  %v837_v5 = vpop.f32.mrb[10].mxu0 }
  0xfd   : > { %v838_v9 = vadd.f32 %v1725_v62, %v837_v5  ;;  %v1869_v10 = vpop.f32.mrb[11].mxu0 }
  0xfe   : > { %912 = vst.msk [vmem:[#allocation3 + $0x10] sm:$0xff] %vm633_vm2, %v910_v4 }
  0xff   : > { %v907_v12 = vpack.c.bf16 %v838_v9, %v835_v8  ;;  %v1038_v13 = vpop.f32.mrb[12].mxu1 }
 0x100   : > { %v1039_v15 = vadd.f32 %v1752_v11, %v1038_v13  ;;  %v1892_v16 = vpop.f32.mrb[13].mxu1 }
 0x101   : > { %909 = vst.msk [vmem:[#allocation2 + $0x10] sm:$0xff] %vm633_vm2, %v907_v12  ;;  %v1041_v17 = vpop.f32.mrb[14].mxu1 }
 0x102   : > { %v972_v19 = vpop.f32.mrb[12].mxu0  ;;  %v1042_v20 = vadd.f32 %v1752_v11, %v1041_v17  ;;  %v1893_v21 = vpop.f32.mrb[15].mxu1 }
 0x103   : > { %v1884_v22 = vpop.f32.mrb[13].mxu0  ;;  %v973_v25 = vadd.f32 %v1743_v18, %v972_v19 }
 0x104   : > { %v1048_v23 = vpack.c.bf16 %v1042_v20, %v1039_v15  ;;  %v975_v24 = vpop.f32.mrb[14].mxu0 }
 0x105   : > { %v976_v26 = vadd.f32 %v1743_v18, %v975_v24  ;;  %v1885_v27 = vpop.f32.mrb[15].mxu0 }
 0x106   : > { %1050 = vst.msk [vmem:[#allocation3 + $0x18] sm:$0xff] %vm633_vm2, %v1048_v23 }
 0x107   : > { %v1045_v28 = vpack.c.bf16 %v976_v26, %v973_v25 }
 0x109   : > { %1047 = vst.msk [vmem:[#allocation2 + $0x18] sm:$0xff] %vm633_vm2, %v1045_v28 }
 0x10a LB: >> { %v2082_v31 = vmov 0.0   ;;  %vm2083_vm3 = vmmov 0   ;;  %s1788_s18 = sshll.u32 %s2078_s17, 4  ;;  %s1762_s22 = sshll.u32 %s2078_s17, 3  ;;  %vm1193_vm4 = vcmask 130048   ;;  %vm1271_vm5 = vcmask 1043456   ;;  %s2078_s17 = sphi %s2321_s17, %s1066_s17   ;;  %v2074_v30 = vphi %v2319_v30, %v2456_v30   ;;  %v2070_v29 = vphi %v2317_v29, %v2455_v29  }
 0x10b   : >> { %1894 = vmatprep.subr.bf16.mxu0 %v2082_v31  ;;  %1898 = vmatprep.mubr.msk.bf16.mxu0 %vm2083_vm3, %v2082_v31  ;;  %s1071_s20 = scalar_lea.vmem %s2443_s2, %s1788_s18  ;;  %s1143_s23 = scalar_lea.vmem [#allocation2], %s1762_s22 }
 0x10c   : >> { %1902 = vmatprep.subr.bf16.mxu1 %v2082_v31  ;;  %1904 = vmatprep.mubr.msk.bf16.mxu1 %vm2083_vm3, %v2082_v31  ;;  %v2008_v32 = vld [vmem:[%s1071_s20] sm:$0xff]   ;;  %v2009_v33 = vld [vmem:[%s1071_s20 + $0x8] sm:$0xff]   ;;  %s1218_s24 = scalar_lea.vmem [#allocation3], %s1762_s22  ;;  %s1076_s15 = scalar_lea.vmem %s2449_s8, %s2078_s17 }
 0x10d   : >> { %1895 = vmatpush3.bf16.msra.mxu0 %v2008_v32  ;;  %v1219_v36 = vld [vmem:[%s1218_s24] sm:$0xff]  ;;  %s1766_s25 = sshll.u32 %s2078_s17, 2  ;;  %s1066_s17 = sadd.s32 1, %s2078_s17  }
 0x10e   : >> { %1896 = vmatprep.subr.bf16.mxu0 %v2082_v31  ;;  %v1758_v37 = vld [vmem:[%s1076_s15] ss:$0 sm:$0xff]  ;;  %s1266_s19 = scalar_lea.vmem %s2446_s5, %s1766_s25  ;;  %p1063_p5 = scmp.ge.s32.totalorder %s1066_s17, 4  }
 0x10f   : >> { %v1267_v61 = vld [vmem:[%s1266_s19] sm:$0xf]  ;;  %vm1477_vm6 = vcmask (%p1063_p5), 523264  }
 0x110   : >> { %v1144_v34 = vld [vmem:[%s1143_s23] sm:$0xff]  ;;  %v1273_v62 = vsel %vm1271_vm5, %v1267_v61, 0 }
 0x111   : >> { %1897 = vmatpush3.bf16.msra.mxu0 %v2009_v33  ;;  %v1150_v35 = vsel %vm633_vm2, %v1144_v34, 0  ;;  %v1768_v21 = vld [vmem:[%s2453_s12] ss:$0 sm:$0xff] (%p1063_p5) }
 0x112   : >> { %1908 = vmatprep.subr.bf16.mxu0 %v2082_v31  ;;  %1903 = vmatpush3.bf16.xpose.msra.mxu1 %v1150_v35 }
 0x113   : >> { %1914 = vmatprep.subr.bf16.mxu1 %v2082_v31 }
 0x114   : >> { %1899 = vmatmul.mubr.msk.bf16.vlgmr.msra.gmra.mrb[0].mxu0 %vm520_vm1, %v2220_v14 }
 0x115   : >> { %1910 = vmatprep.mubr.msk.bf16.mxu0 %vm2083_vm3, %v2082_v31  ;;  %1909 = vmatpush3.bf16.msra.mxu0 %v1219_v36  ;;  %v2019_v36 = vld [vmem:[%s2447_s6 + $0x8] sm:$0xff] (%p1063_p5)  }
 0x116   : > { %1920 = vmatprep.subr.bf16.mxu0 (%p1063_p5), %v2080_v1 }
 0x1e7   : >> { %v1134_v38 = vpop.f32.mrb[0].mxu0 }
 0x1e8   : >> { %v1900_v39 = vpop.f32.mrb[1].mxu0  ;;  %v1135_v41 = vadd.f32 %v1758_v37, %v1134_v38  ;;  %v2021_v38 = vld [vmem:[%s2448_s7 + $0x8] sm:$0xff] (%p1063_p5)  }
 0x1e9   : >> { %v1137_v40 = vpop.f32.mrb[2].mxu0 }
 0x1ea   : >> { %v1138_v42 = vadd.f32 %v1758_v37, %v1137_v40  ;;  %v1901_v43 = vpop.f32.mrb[3].mxu0  ;;  %v2020_v37 = vld [vmem:[%s2448_s7] sm:$0xff] (%p1063_p5)  }
 0x1ec   : >> { %v1141_v44 = vpack.c.bf16 %v1138_v42, %v1135_v41 }
 0x1ee   : >> { %1905 = vmatmul.mubr.msk.bf16.vlgmr.msra.gmra.mrb[0].mxu1 %vm633_vm2, %v1141_v44 }
 0x1ef   : >> { %1916 = vmatprep.mubr.msk.bf16.mxu1 %vm2083_vm3, %v2082_v31  ;;  %1915 = vmatpush3.bf16.msra.mxu1 %v1273_v62 }
 0x1f0   : > { %1928 = vmatprep.subr.bf16.mxu1 (%p1063_p5), %v2080_v1 }
 0x2c1   : >> { %v1186_v45 = vpop.f32.mrb[0].mxu1 }
 0x2c2   : >> { %v1906_v46 = vpop.f32.mrb[1].mxu1  ;;  %v1194_v47 = vsel %vm1193_vm4, %v1186_v45, -inf }
 0x2c3   : >> { %1195 = vmax.xlane.f32.xlu0 %v1194_v47  ;;  %v1189_v48 = vpop.f32.mrb[2].mxu1  ;;  %v1769_v47 = vld [vmem:[%s2453_s12 + $0x2] ss:$0 sm:$0xff] (%p1063_p5) }
 0x2c4   : >> { %v1907_v49 = vpop.f32.mrb[3].mxu1  ;;  %v1197_v50 = vsel %vm1193_vm4, %v1189_v48, -inf }
 0x2c7   : >> { %1198 = vmax.xlane.f32.xlu0 %v1197_v50 }
 0x350   : >> { %v1196_v51 = vpop.xlane.xlu0 %1195 }
 0x351   : >> { %v1200_v52 = vsub.f32 %v1186_v45, %v1196_v51  ;;  %v1770_v51 = vld [vmem:[%s2453_s12 + $0x3] ss:$0 sm:$0xff] (%p1063_p5) }
 0x353   : >> { %v1202_v53 = vmul.f32 1.442695, %v1200_v52 }
 0x354   : >> { %v1199_v54 = vpop.xlane.xlu0 %1198 }
 0x355   : >> { %2010 = vpow2.f32 %v1202_v53  ;;  %v1201_v55 = vsub.f32 %v1189_v48, %v1199_v54 }
 0x357   : >> { %v1204_v56 = vmul.f32 1.442695, %v1201_v55 }
 0x359   : >> { %2012 = vpow2.f32 %v1204_v56  ;;  %v2022_v56 = vld [vmem:[%s2448_s7 + $0x10] sm:$0xff] (%p1063_p5)  }
 0x35f   : >> { %v2011_v57 = vpop.eup %2010 }
 0x360   : >> { %v1206_v58 = vsel %vm1193_vm4, %v2011_v57, 0.0 }
 0x361   : >> { %1207 = vadd.xlane.f32.xlu1 %v1206_v58  ;;  %v1771_v58 = vld [vmem:[%s2452_s11] ss:$0 sm:$0xff] (%p1063_p5) }
 0x363   : >> { %v2013_v59 = vpop.eup %2012 }
 0x364   : >> { %v1209_v60 = vsel %vm1193_vm4, %v2013_v59, 0.0 }
 0x365   : >> { %1210 = vadd.xlane.f32.xlu1 %v1209_v60 }
 0x3ee   : >> { %v1208_v63 = vpop.xlane.xlu1 %1207 }
 0x3ef   : >> { %2014 = vrcp.f32 %v1208_v63 }
 0x3f2   : >> { %v1211_v0 = vpop.xlane.xlu1 %1210 }
 0x3f3   : >> { %2016 = vrcp.f32 %v1211_v0 }
 0x3f9   : >> { %v2015_v2 = vpop.eup %2014 }
 0x3fa   : >> { %v1214_v4 = vmul.f32 %v2015_v2, %v2011_v57  ;;  %v2023_v57 = vld [vmem:[%s2448_s7 + $0x18] sm:$0xff] (%p1063_p5)  }
 0x3fd   : >> { %v2017_v3 = vpop.eup %2016 }
 0x3fe   : >> { %v1215_v5 = vmul.f32 %v2017_v3, %v2013_v59 }
 0x400   : >> { %v1216_v8 = vpack.c.bf16 %v1215_v5, %v1214_v4 }
 0x402   : >> { %1911 = vmatmul.mubr.msk.bf16.vlgmr.msra.gmra.mrb[4].mxu0 %vm1193_vm4, %v1216_v8 }
 0x403   : > { %1924 = vmatprep.mubr.msk.bf16.mxu0 (%p1063_p5), %vm2081_vm0, %v2080_v1 }
 0x4d5   : >> { %v1257_v9 = vpop.f32.mrb[4].mxu0 }
 0x4d6   : >> { %v1912_v10 = vpop.f32.mrb[5].mxu0 }
 0x4d7   : >> { %v1260_v11 = vpop.f32.mrb[6].mxu0 }
 0x4d8   : >> { %v1264_v12 = vpack.c.bf16 %v1260_v11, %v1257_v9  ;;  %v1913_v13 = vpop.f32.mrb[7].mxu0 }
 0x4da   : >> { %1917 = vmatmul.mubr.msk.bf16.vlgmr.msra.gmra.mrb[4].mxu1 %vm633_vm2, %v1264_v12 }
 0x4db   : > { %1936 = vmatprep.mubr.msk.bf16.mxu1 (%p1063_p5), %vm2081_vm0, %v2080_v1  ;;  %1929 = vmatpush3.bf16.msra.mxu1 (%p1063_p5), %v2020_v37 }
 0x4dc   : > { %1930 = vmatprep.subr.bf16.mxu1 (%p1063_p5), %v2080_v1 }
 0x4df   : > { %1931 = vmatpush3.bf16.msra.mxu1 (%p1063_p5), %v2021_v38 }
 0x4e0   : > { %1932 = vmatprep.subr.bf16.mxu1 (%p1063_p5), %v2080_v1 }
 0x4e3   : > { %1933 = vmatpush3.bf16.msra.mxu1 (%p1063_p5), %v2022_v56 }
 0x4e4   : > { %1934 = vmatprep.subr.bf16.mxu1 (%p1063_p5), %v2080_v1 }
 0x4e7   : > { %1935 = vmatpush3.bf16.msra.mxu1 (%p1063_p5), %v2023_v57 }
 0x5ac   : > { %1065 = sbr.rel (!%p1063_p5) target bundleno = 266 (0x10a), region = 141 }
 0x5ad   : >> { %v1309_v15 = vpop.f32.mrb[4].mxu1 }
 0x5ae   : >> { %v1316_v16 = vadd.f32 %v2074_v30, %v1309_v15   ;;  %v1918_v17 = vpop.f32.mrb[5].mxu1 }
 0x5af   : >> { %v1312_v18 = vpop.f32.mrb[6].mxu1 }
 0x5b0   : >> { %v1317_v19 = vadd.f32 %v2070_v29, %v1312_v18   ;;  %v1919_v20 = vpop.f32.mrb[7].mxu1  ;;  %v2456_v30 = vmov %v1316_v16  ;;  %v1323_v22 = vadd.f32 (%p1063_p5), %v1768_v21, %v1316_v16 }
 0x5b2   : >> { %v2455_v29 = vmov %v1317_v19  ;;  %v1324_v23 = vadd.f32 (%p1063_p5), %v1768_v21, %v1317_v19  ;;  %v1325_v24 = vadd.f32 (%p1063_p5), %v1323_v22, %v2204_v6 }
 0x5b4   : > { %v1326_v25 = vadd.f32 %v1324_v23, %v2206_v7  ;;  %v1328_v14 = vsel %vm520_vm1, %v1325_v24, 0.0  ;;  %v2018_v7 = vld [vmem:[%s2447_s6] sm:$0xff]  }
 0x5b5   : > { %1329 = vadd.xlane.f32.xlu0 %v1328_v14  ;;  %1921 = vmatpush3.bf16.msra.mxu0 %v2018_v7  ;;  %v1782_v7 = vld [vmem:[%s2453_s12 + $0x5] ss:$0 sm:$0xff] }
 0x5b6   : > { %v1331_v26 = vsel %vm520_vm1, %v1326_v25, 0.0  ;;  %1922 = vmatprep.subr.bf16.mxu0 %v2080_v1  ;;  %v1775_v1 = vld [vmem:[%s2453_s12 + $0x1] ss:$0 sm:$0xff] }
 0x5b9   : > { %1332 = vadd.xlane.f32.xlu0 %v1331_v26  ;;  %1923 = vmatpush3.bf16.msra.mxu0 %v2019_v36 }
 0x642   : > { %v1330_v27 = vpop.xlane.xlu0 %1329 }
 0x643   : > { %v1335_v28 = vmul.f32 0.03125, %v1330_v27 }
 0x645   : > { %v1337_v29 = vsub.f32 %v1325_v24, %v1335_v28 }
 0x646   : > { %v1333_v30 = vpop.xlane.xlu0 %1332 }
 0x647   : > { %v1336_v31 = vmul.f32 0.03125, %v1333_v30  ;;  %v1339_v32 = vmul.f32 %v1337_v29, %v1337_v29 }
 0x649   : > { %v1338_v33 = vsub.f32 %v1326_v25, %v1336_v31  ;;  %v1341_v34 = vsel %vm520_vm1, %v1339_v32, 0.0 }
 0x64a   : > { %1342 = vadd.xlane.f32.xlu1 %v1341_v34  ;;  %v1781_v34 = vld [vmem:[%s2453_s12 + $0x4] ss:$0 sm:$0xff] }
 0x64b   : > { %v1340_v35 = vmul.f32 %v1338_v33, %v1338_v33 }
 0x64d   : > { %v1344_v6 = vsel %vm520_vm1, %v1340_v35, 0.0 }
 0x64e   : > { %1345 = vadd.xlane.f32.xlu1 %v1344_v6 }
 0x6d7   : > { %v1343_v39 = vpop.xlane.xlu1 %1342 }
 0x6d8   : > { %v1347_v40 = vmul.f32 0.03125, %v1343_v39 }
 0x6da   : > { %v1349_v41 = vadd.f32 1e-05, %v1347_v40 }
 0x6db   : > { %v1346_v42 = vpop.xlane.xlu1 %1345 }
 0x6dc   : > { %2024 = vrsqrt.f32 %v1349_v41  ;;  %v1348_v43 = vmul.f32 0.03125, %v1346_v42 }
 0x6de   : > { %v1350_v44 = vadd.f32 1e-05, %v1348_v43 }
 0x6e0   : > { %2026 = vrsqrt.f32 %v1350_v44 }
 0x6e6   : > { %v2025_v45 = vpop.eup %2024 }
 0x6e7   : > { %v1353_v46 = vmul.f32 %v2025_v45, %v1337_v29 }
 0x6e9   : > { %v1360_v50 = vmul.f32 %v1769_v47, %v1353_v46 }
 0x6ea   : > { %v2027_v48 = vpop.eup %2026 }
 0x6eb   : > { %v1354_v49 = vmul.f32 %v2027_v48, %v1338_v33  ;;  %v1367_v53 = vadd.f32 %v1770_v51, %v1360_v50 }
 0x6ed   : > { %v1361_v52 = vmul.f32 %v1769_v47, %v1354_v49 }
 0x6ef   : > { %v1368_v54 = vadd.f32 %v1770_v51, %v1361_v52 }
 0x6f1   : > { %v1369_v55 = vpack.c.bf16 %v1368_v54, %v1367_v53 }
 0x6f3   : > { %1925 = vmatmul.mubr.msk.bf16.vlgmr.msra.gmra.mrb[0].mxu0 %vm520_vm1, %v1369_v55 }
 0x7c6   : > { %v1430_v59 = vpop.f32.mrb[0].mxu0 }
 0x7c7   : > { %v1431_v60 = vadd.f32 %v1771_v58, %v1430_v59  ;;  %v1926_v61 = vpop.f32.mrb[1].mxu0 }
 0x7c8   : > { %v1433_v62 = vpop.f32.mrb[2].mxu0 }
 0x7c9   : > { %v1434_v63 = vadd.f32 %v1771_v58, %v1433_v62  ;;  %v1927_v0 = vpop.f32.mrb[3].mxu0  ;;  %v1437_v2 = vmax.f32 %v1431_v60, 0.0 }
 0x7cb   : > { %v1438_v3 = vmax.f32 %v1434_v63, 0.0 }
 0x7cd   : > { %v1439_v4 = vpack.c.bf16 %v1438_v3, %v1437_v2 }
 0x7cf   : > { %1937 = vmatmul.mubr.msk.bf16.vlgmr.msra.gmra.mrb[0].mxu1 %vm1477_vm6, %v1439_v4 }
 0x8a2   : > { %v1515_v5 = vpop.f32.mrb[0].mxu1 }
 0x8a3   : > { %v1516_v8 = vadd.f32 %v1775_v1, %v1515_v5  ;;  %v1938_v9 = vpop.f32.mrb[1].mxu1 }
 0x8a4   : > { %v1518_v10 = vpop.f32.mrb[2].mxu1 }
 0x8a5   : > { %v1519_v11 = vadd.f32 %v1775_v1, %v1518_v10  ;;  %v1939_v12 = vpop.f32.mrb[3].mxu1  ;;  %v1522_v13 = vadd.f32 %v1516_v8, %v1367_v53 }
 0x8a7   : > { %v1524_v15 = vsel %vm520_vm1, %v1522_v13, 0.0  ;;  %v1523_v16 = vadd.f32 %v1519_v11, %v1368_v54 }
 0x8a8   : > { %1525 = vadd.xlane.f32.xlu0 %v1524_v15 }
 0x8a9   : > { %v1527_v17 = vsel %vm520_vm1, %v1523_v16, 0.0 }
 0x8aa   : > { %1528 = vadd.xlane.f32.xlu1 %v1527_v17 }
 0x935   : > { %v1526_v18 = vpop.xlane.xlu0 %1525 }
 0x936   : > { %v1530_v19 = vmul.f32 0.03125, %v1526_v18 }
 0x937   : > { %v1529_v20 = vpop.xlane.xlu1 %1528 }
 0x938   : > { %v1532_v21 = vsub.f32 %v1522_v13, %v1530_v19  ;;  %v1531_v22 = vmul.f32 0.03125, %v1529_v20 }
 0x93a   : > { %v1533_v23 = vsub.f32 %v1523_v16, %v1531_v22  ;;  %v1534_v24 = vmul.f32 %v1532_v21, %v1532_v21 }
 0x93c   : > { %v1536_v25 = vsel %vm520_vm1, %v1534_v24, 0.0  ;;  %v1535_v14 = vmul.f32 %v1533_v23, %v1533_v23 }
 0x93d   : > { %1537 = vadd.xlane.f32.xlu0 %v1536_v25 }
 0x93e   : > { %v1539_v26 = vsel %vm520_vm1, %v1535_v14, 0.0 }
 0x93f   : > { %1540 = vadd.xlane.f32.xlu1 %v1539_v26 }
 0x9ca   : > { %v1538_v27 = vpop.xlane.xlu0 %1537 }
 0x9cb   : > { %v1542_v28 = vmul.f32 0.03125, %v1538_v27 }
 0x9cc   : > { %v1541_v29 = vpop.xlane.xlu1 %1540 }
 0x9cd   : > { %v1544_v30 = vadd.f32 1e-05, %v1542_v28  ;;  %v1543_v31 = vmul.f32 0.03125, %v1541_v29 }
 0x9cf   : > { %2028 = vrsqrt.f32 %v1544_v30  ;;  %v1545_v32 = vadd.f32 1e-05, %v1543_v31 }
 0x9d1   : > { %2030 = vrsqrt.f32 %v1545_v32 }
 0x9d9   : > { %v2029_v33 = vpop.eup %2028 }
 0x9da   : > { %v1548_v35 = vmul.f32 %v2029_v33, %v1532_v21 }
 0x9db   : > { %v2031_v6 = vpop.eup %2030 }
 0x9dc   : > { %v1555_v36 = vmul.f32 %v1781_v34, %v1548_v35  ;;  %v1549_v37 = vmul.f32 %v2031_v6, %v1533_v23 }
 0x9de   : > { %v1562_v38 = vadd.f32 %v1782_v7, %v1555_v36  ;;  %v1556_v39 = vmul.f32 %v1781_v34, %v1549_v37 }
 0x9e0   : > { %1564 = vst.msk [vmem:[%s2198_s30] sm:$0xff] %vm520_vm1, %v1562_v38  ;;  %v1563_v40 = vadd.f32 %v1782_v7, %v1556_v39 }
 0x9e2   : > { %1565 = vst.msk [vmem:[%s2198_s30 + $0x8] sm:$0xff] %vm520_vm1, %v1563_v40 }
 0x9e3 PF: > { %s23_s27 = sadd.s32 1, %s2066_s27   ;;  %s2457_s25 = smov %s2062_s26 }
 0x9e4   : > { %p20_p6 = scmp.ge.s32.totalorder %s23_s27, 4   ;;  %s2458_s26 = smov %s2460_s28 }
 0x9e6   :  { %22 = sbr.rel (!%p20_p6) target bundleno = 2 (0x2), region = 152 }

</bundles_post_ra>
